<compile_context>
chip_gen: v6e
topology: v6e:2x2x1
jax: 0.10.0
libtpu: 0.0.40
codegen_flags: <defaults>
</compile_context>

<pallas_src>
import jax
import jax.numpy as jnp
from jax.experimental import pallas as pl
from jax.experimental.pallas import tpu as pltpu

EPS = 1e-6  # matches nn.LayerNorm(embed_dim, eps=1e-06) in Norm2D

# VMEM budgeting: keep everything block-proportional comfortably below v7x's
# 64 MiB per-TC VMEM; v5e/v6e (128 MiB) are then trivially safe.
_VMEM_LIMIT_BYTES = 40 * 1024 * 1024    # scoped VMEM limit (<= ~40 MiB for v7x headroom)
_VMEM_BUDGET_BYTES = 32 * 1024 * 1024   # budget for block-proportional live VMEM
_MAX_BLOCK_IN_BYTES = 4 * 1024 * 1024   # single input block <= ~4 MiB
_N_F32_TEMPS = 2                        # conservative count of live f32 block temps


def _cdiv(a: int, b: int) -> int:
    return (a + b - 1) // b


def _norm2d_kernel(x_ref, w_ref, b_ref, o_ref):
    """LayerNorm over channels (axis=1) at every (image, spatial) position.

    x_ref: (nb, C, T) block of the (N, C, H*W) tensor.
    w_ref, b_ref: (1, C, 1) resident scale / shift.
    """
    x = x_ref[...]
    c = x.shape[1]
    inv_c = jnp.float32(1.0 / c)

    # One pass over the block: E[x] and E[x^2] in f32 (VPU sublane adds),
    # var = E[x^2] - E[x]^2. Keeps a single block-sized f32 temp live instead
    # of two (upcast x AND centered). Cancellation only bites when
    # |mean| >> std, which does not happen for activation maps; reductions
    # stay in f32 regardless of input dtype.
    xf = x.astype(jnp.float32)
    mean = jnp.sum(xf, axis=1, keepdims=True) * inv_c          # (nb, 1, T)
    ex2 = jnp.sum(xf * xf, axis=1, keepdims=True) * inv_c      # (nb, 1, T)
    var = jnp.maximum(ex2 - mean * mean, 0.0)
    inv = jax.lax.rsqrt(var + EPS)                             # EUP slot

    if x.dtype == jnp.float32:
        # f32 path (also mandatory on v5e: no bf16 VALU there).
        w = w_ref[...].astype(jnp.float32)
        b = b_ref[...].astype(jnp.float32)
        y = (xf - mean) * inv * w + b
    else:
        # Sub-32-bit inputs (bf16/fp16): reductions above stay f32, but the
        # elementwise tail runs in the native dtype -> half the vreg / VMEM
        # pressure (helps most on v7x's 64 MiB VMEM).
        w = w_ref[...].astype(x.dtype)
        b = b_ref[...].astype(x.dtype)
        y = (x - mean.astype(x.dtype)) * inv.astype(x.dtype) * w + b

    o_ref[...] = y.astype(o_ref.dtype)


def _pick_blocking(n: int, c: int, hw: int, itemsize: int):
    """Choose (nb, tile_hw): images per block and spatial columns per block."""
    # Live VMEM per block element: double-buffered input + output blocks plus
    # worst-case in-kernel f32 temporaries.
    per_elem = 4 * itemsize + 4 * _N_F32_TEMPS
    budget_elems = _VMEM_BUDGET_BYTES // per_elem
    budget_elems = min(budget_elems, _MAX_BLOCK_IN_BYTES // itemsize)
    cols_budget = max(1, budget_elems // c)

    if hw <= cols_budget:
        # Small-HW path: keep the full spatial extent in the lane axis and
        # batch several images per grid step (amortizes ~0.35 us/step and
        # keeps stores dense for HW like 196 / 49).
        tile_hw = hw
        nb = max(1, min(n, cols_budget // hw))
    else:
        # Large-HW path: one image per step, lane-dense spatial tile
        # (multiple of 128), capped by the VMEM budget.
        nb = 1
        if hw <= 128:
            tile_hw = hw
        else:
            tile_hw = max(128, (cols_budget // 128) * 128)
            hw_padded = _cdiv(hw, 128) * 128
            tile_hw = min(tile_hw, hw_padded)

    # v7x megacore friendliness: both grid axes are "parallel"; prefer an even
    # total step count so the two TensorCores split the work evenly. Split the
    # batch/spatial blocking while that is cheap; give up on tensors too small
    # to split sensibly (a single tiny step is fine).
    for _ in range(4):
        steps = _cdiv(n, nb) * _cdiv(hw, tile_hw)
        if steps >= 2 and steps % 2 == 0:
            break
        if nb > 1:
            nb = _cdiv(nb, 2)
        elif tile_hw >= 256:
            tile_hw = max(128, ((tile_hw // 2 + 127) // 128) * 128)
        else:
            break
    return nb, tile_hw


@jax.jit
def norm2d(x_nchw, weight, bias):
    """Equivalent of Norm2D.forward.

    Args:
      x_nchw: (N, C, H, W) input.
      weight: (C,) LayerNorm scale.
      bias:   (C,) LayerNorm shift.
    Returns:
      (N, C, H, W) output (LayerNorm over C at each (n, h, w)).
    """
    N, C, H, W = x_nchw.shape
    HW = H * W

    # Free reshape (no transpose, no extra HBM pass).
    x3 = x_nchw.reshape(N, C, HW)
    w3 = weight.reshape(1, C, 1)
    b3 = bias.reshape(1, C, 1)

    itemsize = jnp.dtype(x_nchw.dtype).itemsize
    nb, tile_hw = _pick_blocking(N, C, HW, itemsize)
    grid = (_cdiv(N, nb), _cdiv(HW, tile_hw))

    cost = pl.CostEstimate(
        flops=8 * N * C * HW,
        transcendentals=N * HW,
        bytes_accessed=2 * N * C * HW * itemsize + 2 * C * jnp.dtype(weight.dtype).itemsize,
    )

    out3 = pl.pallas_call(
        _norm2d_kernel,
        out_shape=jax.ShapeDtypeStruct((N, C, HW), x_nchw.dtype),
        grid_spec=pltpu.PrefetchScalarGridSpec(
            num_scalar_prefetch=0,
            grid=grid,
            in_specs=[
                pl.BlockSpec((nb, C, tile_hw), lambda n, t: (n, 0, t)),
                pl.BlockSpec((1, C, 1), lambda n, t: (0, 0, 0)),  # resident scale
                pl.BlockSpec((1, C, 1), lambda n, t: (0, 0, 0)),  # resident shift
            ],
            out_specs=pl.BlockSpec((nb, C, tile_hw), lambda n, t: (n, 0, t)),
        ),
        compiler_params=pltpu.CompilerParams(
            dimension_semantics=("parallel", "parallel"),
            vmem_limit_bytes=_VMEM_LIMIT_BYTES,
        ),
        cost_estimate=cost,
    )(x3, w3, b3)

    return out3.reshape(N, C, H, W)


if __name__ == "__main__":
    # Deterministic parameters matching nn.LayerNorm default init:
    # weight = ones(embed_dim), bias = zeros(embed_dim).
    N, C, H, W = 2, 4, 16, 16
    embed_dim = C

    key = jax.random.PRNGKey(0)
    x = jax.random.normal(key, (N, C, H, W), dtype=jnp.float32)
    weight = jnp.ones((embed_dim,), dtype=jnp.float32)
    bias = jnp.zeros((embed_dim,), dtype=jnp.float32)

    y = norm2d(x, weight, bias)
    jax.block_until_ready(y)

    # Pure-JAX reference of the same math (NCHW -> NHWC -> LN -> NCHW).
    x_nhwc = jnp.transpose(x, (0, 2, 3, 1))
    mean = jnp.mean(x_nhwc, axis=-1, keepdims=True)
    var = jnp.mean((x_nhwc - mean) ** 2, axis=-1, keepdims=True)
    ref = (x_nhwc - mean) * jax.lax.rsqrt(var + EPS) * weight + bias
    ref = jnp.transpose(ref, (0, 3, 1, 2))

    assert y.shape == x.shape
    assert jnp.max(jnp.abs(y - ref)) < 1e-5

    print("KERNEL_OK")
</pallas_src>

<mosaic_0001>
module attributes {stable_mosaic.version = 11 : i64} {
  func.func @_norm2d_kernel(%arg0: i32, %arg1: i32, %arg2: memref<1x4x256xf32, #tpu.memory_space<vmem>>, %arg3: memref<1x4x1xf32, #tpu.memory_space<vmem>>, %arg4: memref<1x4x1xf32, #tpu.memory_space<vmem>>, %arg5: memref<1x4x256xf32, #tpu.memory_space<vmem>>) attributes {dimension_semantics = [#tpu.dimension_semantics<parallel>, #tpu.dimension_semantics<parallel>], iteration_bounds = array<i64: 2, 1>, scalar_prefetch = 0 : i64, scratch_operands = 0 : i64, tpu.core_type = #tpu.core_type<tc>, window_params = [{transform_indices = @transform_0, window_bounds = array<i64: 1, 4, 256>}, {pipeline_mode = #tpu.pipeline_mode<synchronous>, transform_indices = @transform_1, window_bounds = array<i64: 1, 4, 1>}, {pipeline_mode = #tpu.pipeline_mode<synchronous>, transform_indices = @transform_2, window_bounds = array<i64: 1, 4, 1>}, {transform_indices = @transform_3, window_bounds = array<i64: 1, 4, 256>}]} {
    %c0 = arith.constant 0 : index
    %c0_0 = arith.constant 0 : index
    %c0_1 = arith.constant 0 : index
    %0 = vector.load %arg2[%c0, %c0_0, %c0_1] : memref<1x4x256xf32, #tpu.memory_space<vmem>>, vector<1x4x256xf32>
    %cst = arith.constant dense<0.000000e+00> : vector<1x256xf32>
    %1 = vector.multi_reduction <add>, %0, %cst [1] : vector<1x4x256xf32> to vector<1x256xf32>
    %2 = vector.shape_cast %1 : vector<1x256xf32> to vector<1x1x256xf32>
    %cst_2 = arith.constant 2.500000e-01 : f32
    %3 = vector.broadcast %cst_2 : f32 to vector<1x1x256xf32>
    %4 = arith.mulf %2, %3 : vector<1x1x256xf32>
    %5 = arith.mulf %0, %0 : vector<1x4x256xf32>
    %cst_3 = arith.constant dense<0.000000e+00> : vector<1x256xf32>
    %6 = vector.multi_reduction <add>, %5, %cst_3 [1] : vector<1x4x256xf32> to vector<1x256xf32>
    %7 = vector.shape_cast %6 : vector<1x256xf32> to vector<1x1x256xf32>
    %cst_4 = arith.constant 2.500000e-01 : f32
    %8 = vector.broadcast %cst_4 : f32 to vector<1x1x256xf32>
    %9 = arith.mulf %7, %8 : vector<1x1x256xf32>
    %10 = arith.mulf %4, %4 : vector<1x1x256xf32>
    %11 = arith.subf %9, %10 : vector<1x1x256xf32>
    %cst_5 = arith.constant 0.000000e+00 : f32
    %12 = vector.broadcast %cst_5 : f32 to vector<1x1x256xf32>
    %13 = arith.maximumf %11, %12 : vector<1x1x256xf32>
    %cst_6 = arith.constant 9.99999997E-7 : f32
    %14 = vector.broadcast %cst_6 : f32 to vector<1x1x256xf32>
    %15 = arith.addf %13, %14 : vector<1x1x256xf32>
    %16 = math.rsqrt %15 : vector<1x1x256xf32>
    %c0_7 = arith.constant 0 : index
    %c0_8 = arith.constant 0 : index
    %c0_9 = arith.constant 0 : index
    %17 = vector.load %arg3[%c0_7, %c0_8, %c0_9] : memref<1x4x1xf32, #tpu.memory_space<vmem>>, vector<1x4x1xf32>
    %c0_10 = arith.constant 0 : index
    %c0_11 = arith.constant 0 : index
    %c0_12 = arith.constant 0 : index
    %18 = vector.load %arg4[%c0_10, %c0_11, %c0_12] : memref<1x4x1xf32, #tpu.memory_space<vmem>>, vector<1x4x1xf32>
    %19 = vector.broadcast %4 : vector<1x1x256xf32> to vector<1x4x256xf32>
    %20 = arith.subf %0, %19 : vector<1x4x256xf32>
    %21 = vector.broadcast %16 : vector<1x1x256xf32> to vector<1x4x256xf32>
    %22 = arith.mulf %20, %21 : vector<1x4x256xf32>
    %23 = vector.broadcast %17 : vector<1x4x1xf32> to vector<1x4x256xf32>
    %24 = arith.mulf %22, %23 : vector<1x4x256xf32>
    %25 = vector.broadcast %18 : vector<1x4x1xf32> to vector<1x4x256xf32>
    %26 = arith.addf %24, %25 : vector<1x4x256xf32>
    %c0_13 = arith.constant 0 : index
    %c0_14 = arith.constant 0 : index
    %c0_15 = arith.constant 0 : index
    %27 = vector.load %arg5[%c0_13, %c0_14, %c0_15] : memref<1x4x256xf32, #tpu.memory_space<vmem>>, vector<1x4x256xf32>
    tpu.vector_store %arg5[%c0_13, %c0_14, %c0_15], %26 {strides = array<i32>} : memref<1x4x256xf32, #tpu.memory_space<vmem>>, vector<1x4x256xf32>,
    return
  }
  func.func @transform_0(%arg0: i32, %arg1: i32) -> (i32, i32, i32) {
    %c0_i32 = arith.constant 0 : i32
    %c0_i32_0 = arith.constant 0 : i32
    return %arg0, %c0_i32, %arg1 : i32, i32, i32
  }
  func.func @transform_1(%arg0: i32, %arg1: i32) -> (i32, i32, i32) {
    %c0_i32 = arith.constant 0 : i32
    %c0_i32_0 = arith.constant 0 : i32
    %c0_i32_1 = arith.constant 0 : i32
    %c0_i32_2 = arith.constant 0 : i32
    return %c0_i32, %c0_i32_0, %c0_i32_1 : i32, i32, i32
  }
  func.func @transform_2(%arg0: i32, %arg1: i32) -> (i32, i32, i32) {
    %c0_i32 = arith.constant 0 : i32
    %c0_i32_0 = arith.constant 0 : i32
    %c0_i32_1 = arith.constant 0 : i32
    %c0_i32_2 = arith.constant 0 : i32
    return %c0_i32, %c0_i32_0, %c0_i32_1 : i32, i32, i32
  }
  func.func @transform_3(%arg0: i32, %arg1: i32) -> (i32, i32, i32) {
    %c0_i32 = arith.constant 0 : i32
    %c0_i32_0 = arith.constant 0 : i32
    return %arg0, %c0_i32, %arg1 : i32, i32, i32
  }
}

</mosaic_0001>

<bundles_post_ra>
// kernel: norm2d.1
= control target key start
LH: loop header
LB: loop body
LE: loop exit
PB: predicated region body
PF: predicated region fallthrough
CT: control target
= control target key end

     0   :  { %s478_s12 = smov 0   ;;  %s480_s13 = smov 0   ;;  %s524_s0 = inlined_call_operand.vmem [shape: f32[2,4,256], index: 0, kind: input, shape index: {}]   ;;  %s525_s1 = inlined_call_operand.vmem [shape: f32[1,4,1], index: 1, kind: input, shape index: {}]   ;;  %s526_s2 = inlined_call_operand.vmem [shape: f32[1,4,1], index: 2, kind: input, shape index: {}]   ;;  %s527_s3 = inlined_call_operand.vmem [shape: f32[2,4,256], index: 3, kind: output, shape index: {}]  }
   0x1   :  { %s482_s14 = smov 0  }
   0x2 LB: > { %s25_s15 = sadd.s32 1, %s450_s13  ;;  %p391_p0 = scmp.ge.s32.totalorder %s454_s14, 1  ;;  %s454_s14 = sphi %s482_s14, %s13_s14   ;;  %s450_s13 = sphi %s480_s13, %s529_s13   ;;  %s446_s12 = sphi %s478_s12, %s528_s12  }
   0x3   : > { %p27_p1 = scmp.ge.s32.totalorder %s25_s15, 2  ;;  %p158_p2 = scmp.lt.s32.totalorder %s454_s14, 3 }
   0x5   : > { %s531_s15 = smov (%p27_p1, %s25_s15), 0  ;;  %p159_p3 = pnand %p391_p0, %p158_p2 }
   0x6   : > { %p191_p4 = scmp.lt.s32.totalorder (!%p159_p3), %s446_s12, 1 }
   0x7   : > { %162 = sbr.rel (%p159_p3) target bundleno = 147 (0x93), region = 32 }
   0xc   : > { %v261_v0 = vld [vmem:[%s525_s1] sm:$0xf]  ;;  %v456_v1 = vmov 0   ;;  %s533_s12 = smov (!%p191_p4, %s446_s12), 1  ;;  %vm214_vm0 = vcmask 1043456   ;;  %v280_v49 = vlaneseq }
   0xd   : > { %426 = vset.pattern.permute.xlu0 %v456_v1  ;;  %v262_v2 = vld [vmem:[%s526_s2] sm:$0xf]  ;;  %s398_s20 = sshll.u32 %s533_s12, 3  ;;  %v457_v47 = vmov 839922192  }
   0xe   : > { %275 = vperm.xlu0 %426, %v261_v0   ;;  %s198_s23 = scalar_lea.vmem %s524_s0, %s398_s20  ;;  %v278_v48 = vunpack.c.l.s4 %v457_v47  ;;  %v281_v52 = vshrl.u32 %v280_v49, 7  ;;  %s208_s26 = scalar_lea.vmem %s527_s3, %s398_s20 }
   0xf   : > { %v210_v3 = vld [vmem:[%s198_s23] sm:$0xff] }
  0x10   : > { %v212_v4 = vcombine.high %v210_v3, %v210_v3  ;;  %v231_v5 = vmul.f32 %v210_v3, %v210_v3  ;;  %v215_v6 = vsel %vm214_vm0, %v210_v3, 0.0  ;;  %v279_v51 = vunpack.c.0.s8 %v278_v48 }
  0x11   : > { %v216_v9 = vrot.slane %v215_v6, 4 }
  0x12   : > { %288 = vperm.xlu0 %426, %v262_v2   ;;  %v222_v7 = vsel %vm214_vm0, %v212_v4, 0.0  ;;  %v233_v8 = vcombine.high %v231_v5, %v231_v5  ;;  %v235_v11 = vsel %vm214_vm0, %v231_v5, 0.0  ;;  %v282_v55 = vsub.s32 %v279_v51, %v281_v52 }
  0x13   : > { %v223_v10 = vrot.slane %v222_v7, 4  ;;  %v217_v13 = vadd.f32 %v216_v9, %v215_v6  ;;  %v236_v14 = vrot.slane %v235_v11, 4 }
  0x14   : > { %v242_v12 = vsel %vm214_vm0, %v233_v8, 0.0 }
  0x15   : > { %v224_v15 = vadd.f32 %v223_v10, %v222_v7  ;;  %v243_v16 = vrot.slane %v242_v12, 4  ;;  %v218_v17 = vrot.slane %v217_v13, 2  ;;  %v237_v18 = vadd.f32 %v236_v14, %v235_v11 }
  0x17   : > { %v225_v19 = vrot.slane %v224_v15, 2  ;;  %v244_v20 = vadd.f32 %v243_v16, %v242_v12  ;;  %v219_v21 = vadd.f32 %v218_v17, %v217_v13  ;;  %v238_v22 = vrot.slane %v237_v18, 2 }
  0x19   : > { %v226_v23 = vadd.f32 %v225_v19, %v224_v15  ;;  %v245_v24 = vrot.slane %v244_v20, 2  ;;  %v220_v25 = vrot.slane %v219_v21, 1  ;;  %v239_v26 = vadd.f32 %v238_v22, %v237_v18 }
  0x1b   : > { %v227_v27 = vrot.slane %v226_v23, 1  ;;  %v246_v28 = vadd.f32 %v245_v24, %v244_v20  ;;  %v221_v29 = vadd.f32 %v220_v25, %v219_v21  ;;  %v240_v30 = vrot.slane %v239_v26, 1 }
  0x1d   : > { %v228_v31 = vadd.f32 %v227_v27, %v226_v23  ;;  %v247_v32 = vrot.slane %v246_v28, 1  ;;  %v229_v33 = vmul.f32 0.25, %v221_v29  ;;  %v241_v34 = vadd.f32 %v240_v30, %v239_v26 }
  0x1f   : > { %v230_v35 = vmul.f32 0.25, %v228_v31  ;;  %v248_v36 = vadd.f32 %v247_v32, %v246_v28  ;;  %v249_v37 = vmul.f32 0.25, %v241_v34  ;;  %v251_v38 = vmul.f32 %v229_v33, %v229_v33 }
  0x21   : > { %v250_v39 = vmul.f32 0.25, %v248_v36  ;;  %v252_v40 = vmul.f32 %v230_v35, %v230_v35  ;;  %v253_v41 = vsub.f32 %v249_v37, %v251_v38  ;;  %v265_v53 = vcombine.low %v229_v33, %v230_v35 }
  0x23   : > { %v254_v42 = vsub.f32 %v250_v39, %v252_v40  ;;  %v255_v43 = vmax.f32 %v253_v41, 0.0  ;;  %v267_v56 = vsub.f32 %v210_v3, %v265_v53 }
  0x25   : > { %v256_v44 = vmax.f32 %v254_v42, 0.0  ;;  %v257_v45 = vadd.f32 1e-06, %v255_v43 }
  0x27   : > { %v258_v46 = vadd.f32 1e-06, %v256_v44  ;;  %428 = vrsqrt.f32 %v257_v45 }
  0x29   : > { %430 = vrsqrt.f32 %v258_v46 }
  0x34   : > { %v429_v50 = vpop.eup %428 }
  0x36   : > { %v431_v54 = vpop.eup %430 }
  0x37   : > { %v270_v57 = vcombine.low %v429_v50, %v431_v54 }
  0x39   : > { %v272_v59 = vmul.f32 %v270_v57, %v267_v56 }
  0x89   : > { %v276_v58 = vpop.permute.xlu0 %275 }
  0x8a   : > { %v283_v60 = vrot.slane %v276_v58, %v282_v55 }
  0x8c   : > { %v285_v62 = vmul.f32 %v283_v60, %v272_v59 }
  0x8d   : > { %v289_v61 = vpop.permute.xlu0 %288 }
  0x8e   : > { %v296_v63 = vrot.slane %v289_v61, %v282_v55 }
  0x90   : > { %v298_v0 = vadd.f32 %v296_v63, %v285_v62 }
  0x92   : > { %299 = vst [vmem:[%s208_s26] sm:$0xff] %v298_v0 }
  0x93 PF: > { %s13_s14 = sadd.s32 1, %s454_s14   ;;  %s528_s12 = smov %s450_s13 }
  0x94   : > { %p10_p5 = scmp.ge.s32.totalorder %s13_s14, 4   ;;  %s529_s13 = smov %s531_s15 }
  0x96   :  { %12 = sbr.rel (!%p10_p5) target bundleno = 2 (0x2), region = 62 }

</bundles_post_ra>
